<compile_context>
chip_gen: v6e
topology: v6e:2x2x1
jax: 0.10.0
libtpu: 0.0.40
codegen_flags: <defaults>
</compile_context>

<pallas_src>
import jax
import jax.numpy as jnp
from jax import lax
from jax.experimental import pallas as pl
from jax.experimental.pallas import tpu as pltpu

# ---- synthetic basic_net config (small shapes) ----
B, C_IN, H, W = 2, 4, 16, 16
KH = KW = 3
C_OUT = 8
N_CLASSES = 100
HW = H * W                       # 256
BHW = B * HW                     # 512  (lane axis of the conv activation)
CKK = C_IN * KH * KW             # 36
CKK_PAD = 48                     # contraction dim padded to bf16 sublane multiple (16)
N_PAD = 128                      # zero-padded class dim -> lane-dense output


def _basic_net_kernel(pt_ref, w1_ref, b1_ref, pool_ref, fcw_ref, fcb_ref, o_ref):
    """Single step for the whole (tiny) batch.

    pt_ref   : [CKK_PAD, B*HW]  bf16  im2col patches, transposed (spatial on lanes)
    w1_ref   : [C_OUT, CKK_PAD] bf16  conv weight (padded K)
    b1_ref   : [C_OUT, 1]       f32
    pool_ref : [B*HW, B]        bf16  block-diagonal 1/HW averaging matrix (pre-transposed)
    fcw_ref  : [C_OUT, N_PAD]   bf16  FC weight (zero-padded classes)
    fcb_ref  : [1, N_PAD]       f32
    o_ref    : [B, N_PAD]       f32   lane-dense logits (sliced to 100 outside)
    """
    # Conv2d(3x3, pad=1) as one MXU matmul for the whole batch; spatial on the
    # lane axis -> bias/ReLU run on fully dense vregs (f32 VPU math).
    h_t = jnp.dot(w1_ref[...], pt_ref[...],
                  preferred_element_type=jnp.float32)              # [C_OUT, B*HW]
    h_t = jnp.maximum(h_t + b1_ref[...], 0.0)                      # bias + ReLU

    # Batched global average pool as a canonical [M,K]x[K,N] matmul
    # (no XLU transpose of h_t):  pooled_t[c, b] = sum_s h_t[c, s] * pool[s, b]
    pooled_t = jnp.dot(h_t.astype(jnp.bfloat16), pool_ref[...],
                       preferred_element_type=jnp.float32)         # [C_OUT, B]

    # Final linear classifier: contract C_OUT (dim 0 of both operands) onto a
    # lane-dense [B, 128] tile.
    logits = lax.dot_general(
        pooled_t.astype(jnp.bfloat16), fcw_ref[...],
        dimension_numbers=(((0,), (0,)), ((), ())),
        preferred_element_type=jnp.float32)                        # [B, N_PAD]
    o_ref[...] = logits + fcb_ref[...]


def _im2col_nchw(x):
    """x: [B, C, H, W] (NCHW) -> patches [B, H*W, C*KH*KW], pad=1, stride=1."""
    b, c, h, w = x.shape
    xp = jnp.pad(x, ((0, 0), (0, 0), (1, 1), (1, 1)))
    cols = [xp[:, :, kh:kh + h, kw:kw + w] for kh in range(KH) for kw in range(KW)]
    patches = jnp.stack(cols, axis=2)                 # [B, C, KH*KW, H, W]
    patches = patches.reshape(b, c * KH * KW, h, w)   # flatten (c, kh, kw), c-major
    patches = patches.transpose(0, 2, 3, 1)           # [B, H, W, CKK]
    return patches.reshape(b, h * w, c * KH * KW)


@jax.jit
def basic_net_pallas(x, kparams):
    """Synthetic basic_net forward: returns (logits, features).

    Entire forward (im2col, padding/casts, Pallas step, class slice) is one
    jit region so the wrapper ops fuse instead of dispatching eagerly.
    """
    w1, b1, pool_col, fcw, fcb = kparams
    # TODO(synk): im2col could move fully in-kernel (9 shifted-view matmuls on
    # the 8 KiB raw image) to reach the single-launch ceiling; under jit the
    # fused wrapper im2col + 48 KiB patch DMA is already close at this size.
    patches = _im2col_nchw(x).reshape(BHW, CKK)                    # [B*HW, CKK]
    patches_t = jnp.pad(patches.T.astype(jnp.bfloat16),
                        ((0, CKK_PAD - CKK), (0, 0)))              # [CKK_PAD, B*HW]

    out = pl.pallas_call(
        _basic_net_kernel,
        out_shape=jax.ShapeDtypeStruct((B, N_PAD), jnp.float32),
        grid=(1,),                                    # single fused step (B folded in)
        in_specs=[
            pl.BlockSpec((CKK_PAD, BHW), lambda i: (0, 0)),
            pl.BlockSpec((C_OUT, CKK_PAD), lambda i: (0, 0)),
            pl.BlockSpec((C_OUT, 1), lambda i: (0, 0)),
            pl.BlockSpec((BHW, B), lambda i: (0, 0)),
            pl.BlockSpec((C_OUT, N_PAD), lambda i: (0, 0)),
            pl.BlockSpec((1, N_PAD), lambda i: (0, 0)),
        ],
        out_specs=pl.BlockSpec((B, N_PAD), lambda i: (0, 0)),
        compiler_params=pltpu.CompilerParams(
            # TODO(synk): if B / H*W grow, add a leading "parallel" batch axis
            # so v7x's second TensorCore is used; at B=2 there is nothing to shard.
            dimension_semantics=("arbitrary",)),
    )(patches_t, w1, b1, pool_col, fcw, fcb)

    logits = out[:, :N_CLASSES]          # fused inside this jit region
    return logits, None                  # features not needed by Attack_None


def attack_none_forward(inputs, targets, kparams, attack=None, batch_idx=-1):
    """Pallas equivalent of Attack_None.forward: (outputs, None)."""
    # TODO(synk): train()/eval() mode toggling is a no-op for this stateless
    # synthetic net (no BN/dropout).
    del targets, attack, batch_idx
    outputs, _ = basic_net_pallas(inputs, kparams)
    return outputs, None


def init_raw_params(key):
    """PyTorch-layout parameters (f32)."""
    k1, k2, k3, k4 = jax.random.split(key, 4)
    w1 = jax.random.normal(k1, (C_OUT, C_IN, KH, KW), jnp.float32) * 0.1
    b1 = jax.random.normal(k2, (C_OUT,), jnp.float32) * 0.01
    fcw = jax.random.normal(k3, (N_CLASSES, C_OUT), jnp.float32) * 0.1
    fcb = jax.random.normal(k4, (N_CLASSES,), jnp.float32) * 0.01
    return w1, b1, fcw, fcb


def prepare_kernel_params(raw):
    """Convert to the padded / transposed layouts the kernel consumes (once)."""
    w1, b1, fcw, fcb = raw
    w1_mat = jnp.pad(w1.reshape(C_OUT, CKK),
                     ((0, 0), (0, CKK_PAD - CKK))).astype(jnp.bfloat16)   # [C_OUT, CKK_PAD]
    b1_col = b1.reshape(C_OUT, 1)                                          # [C_OUT, 1] f32
    # Block-diagonal averaging matrix, pre-transposed: pool_col[s, b] = 1/HW
    # iff spatial index s belongs to batch b.  1/256 is exact in bf16.
    pool_col = (jnp.repeat(jnp.eye(B, dtype=jnp.float32), HW, axis=0)
                / HW).astype(jnp.bfloat16)                                  # [B*HW, B]
    fcw_t = jnp.zeros((C_OUT, N_PAD), jnp.float32).at[:, :N_CLASSES].set(
        fcw.T).astype(jnp.bfloat16)                                         # [C_OUT, N_PAD]
    fcb_row = jnp.zeros((1, N_PAD), jnp.float32).at[0, :N_CLASSES].set(fcb)  # [1, N_PAD] f32
    return w1_mat, b1_col, pool_col, fcw_t, fcb_row


def basic_net_reference(x, raw):
    """Pure-JAX f32 reference of the synthetic basic_net."""
    w1, b1, fcw, fcb = raw
    patches = _im2col_nchw(x)                                      # [B, HW, CKK]
    h = jnp.einsum("bpk,ck->bpc", patches, w1.reshape(C_OUT, CKK)) + b1
    h = jnp.maximum(h, 0.0)
    pooled = h.mean(axis=1)                                        # [B, C_OUT]
    return pooled @ fcw.T + fcb


if __name__ == "__main__":
    key = jax.random.PRNGKey(0)
    kx, kt, kp = jax.random.split(key, 3)
    x = jax.random.normal(kx, (B, C_IN, H, W), jnp.float32)        # NCHW
    targets = jax.random.randint(kt, (B,), 0, N_CLASSES)
    raw = init_raw_params(kp)
    kparams = prepare_kernel_params(raw)

    outputs, none_val = attack_none_forward(x, targets, kparams)
    outputs = jax.block_until_ready(outputs)

    ref = basic_net_reference(x, raw)
    assert outputs.shape == (B, N_CLASSES)
    assert none_val is None
    assert bool(jnp.allclose(outputs, ref, rtol=5e-2, atol=5e-2)), (
        "max abs err = %f" % float(jnp.max(jnp.abs(outputs - ref))))
    print("KERNEL_OK")
</pallas_src>

<mosaic_0001>
module attributes {stable_mosaic.version = 11 : i64} {
  func.func @_basic_net_kernel(%arg0: i32, %arg1: memref<48x512xbf16, #tpu.memory_space<vmem>>, %arg2: memref<8x48xbf16, #tpu.memory_space<vmem>>, %arg3: memref<8x1xf32, #tpu.memory_space<vmem>>, %arg4: memref<512x2xbf16, #tpu.memory_space<vmem>>, %arg5: memref<8x128xbf16, #tpu.memory_space<vmem>>, %arg6: memref<1x128xf32, #tpu.memory_space<vmem>>, %arg7: memref<2x128xf32, #tpu.memory_space<vmem>>) attributes {dimension_semantics = [#tpu.dimension_semantics<arbitrary>], iteration_bounds = array<i64: 1>, scalar_prefetch = 0 : i64, scratch_operands = 0 : i64, tpu.core_type = #tpu.core_type<tc>, window_params = [{pipeline_mode = #tpu.pipeline_mode<synchronous>, transform_indices = @transform_0, window_bounds = array<i64: 48, 512>}, {pipeline_mode = #tpu.pipeline_mode<synchronous>, transform_indices = @transform_1, window_bounds = array<i64: 8, 48>}, {pipeline_mode = #tpu.pipeline_mode<synchronous>, transform_indices = @transform_2, window_bounds = array<i64: 8, 1>}, {pipeline_mode = #tpu.pipeline_mode<synchronous>, transform_indices = @transform_3, window_bounds = array<i64: 512, 2>}, {pipeline_mode = #tpu.pipeline_mode<synchronous>, transform_indices = @transform_4, window_bounds = array<i64: 8, 128>}, {pipeline_mode = #tpu.pipeline_mode<synchronous>, transform_indices = @transform_5, window_bounds = array<i64: 1, 128>}, {pipeline_mode = #tpu.pipeline_mode<synchronous>, transform_indices = @transform_6, window_bounds = array<i64: 2, 128>}]} {
    %c0 = arith.constant 0 : index
    %c0_0 = arith.constant 0 : index
    %0 = vector.load %arg2[%c0, %c0_0] : memref<8x48xbf16, #tpu.memory_space<vmem>>, vector<8x48xbf16>
    %c0_1 = arith.constant 0 : index
    %c0_2 = arith.constant 0 : index
    %1 = vector.load %arg1[%c0_1, %c0_2] : memref<48x512xbf16, #tpu.memory_space<vmem>>, vector<48x512xbf16>
    %cst = arith.constant dense<0.000000e+00> : vector<8x512xf32>
    %2 = tpu.matmul %0, %1, %cst {dimension_numbers = #tpu.dot_dimension_numbers<[1], [0], [0], [1], [0, 0, 1, 1], [], []>} : vector<8x48xbf16>, vector<48x512xbf16>, vector<8x512xf32> -> vector<8x512xf32>
    %c0_3 = arith.constant 0 : index
    %c0_4 = arith.constant 0 : index
    %3 = vector.load %arg3[%c0_3, %c0_4] : memref<8x1xf32, #tpu.memory_space<vmem>>, vector<8x1xf32>
    %4 = vector.broadcast %3 : vector<8x1xf32> to vector<8x512xf32>
    %5 = arith.addf %2, %4 : vector<8x512xf32>
    %cst_5 = arith.constant 0.000000e+00 : f32
    %6 = vector.broadcast %cst_5 : f32 to vector<8x512xf32>
    %7 = arith.maximumf %5, %6 : vector<8x512xf32>
    %8 = arith.truncf %7 : vector<8x512xf32> to vector<8x512xbf16>
    %c0_6 = arith.constant 0 : index
    %c0_7 = arith.constant 0 : index
    %9 = vector.load %arg4[%c0_6, %c0_7] : memref<512x2xbf16, #tpu.memory_space<vmem>>, vector<512x2xbf16>
    %cst_8 = arith.constant dense<0.000000e+00> : vector<8x2xf32>
    %10 = tpu.matmul %8, %9, %cst_8 {dimension_numbers = #tpu.dot_dimension_numbers<[1], [0], [0], [1], [0, 0, 1, 1], [], []>} : vector<8x512xbf16>, vector<512x2xbf16>, vector<8x2xf32> -> vector<8x2xf32>
    %11 = arith.truncf %10 : vector<8x2xf32> to vector<8x2xbf16>
    %c0_9 = arith.constant 0 : index
    %c0_10 = arith.constant 0 : index
    %12 = vector.load %arg5[%c0_9, %c0_10] : memref<8x128xbf16, #tpu.memory_space<vmem>>, vector<8x128xbf16>
    %cst_11 = arith.constant dense<0.000000e+00> : vector<2x128xf32>
    %13 = tpu.matmul %11, %12, %cst_11 {dimension_numbers = #tpu.dot_dimension_numbers<[0], [0], [1], [1], [0, 1, 1, 1], [], []>} : vector<8x2xbf16>, vector<8x128xbf16>, vector<2x128xf32> -> vector<2x128xf32>
    %c0_12 = arith.constant 0 : index
    %c0_13 = arith.constant 0 : index
    %14 = vector.load %arg6[%c0_12, %c0_13] : memref<1x128xf32, #tpu.memory_space<vmem>>, vector<1x128xf32>
    %15 = vector.broadcast %14 : vector<1x128xf32> to vector<2x128xf32>
    %16 = arith.addf %13, %15 : vector<2x128xf32>
    %c0_14 = arith.constant 0 : index
    %c0_15 = arith.constant 0 : index
    %17 = vector.load %arg7[%c0_14, %c0_15] : memref<2x128xf32, #tpu.memory_space<vmem>>, vector<2x128xf32>
    tpu.vector_store %arg7[%c0_14, %c0_15], %16 {strides = array<i32>} : memref<2x128xf32, #tpu.memory_space<vmem>>, vector<2x128xf32>,
    return
  }
  func.func @transform_0(%arg0: i32) -> (i32, i32) {
    %c0_i32 = arith.constant 0 : i32
    %c0_i32_0 = arith.constant 0 : i32
    %c0_i32_1 = arith.constant 0 : i32
    return %c0_i32, %c0_i32_0 : i32, i32
  }
  func.func @transform_1(%arg0: i32) -> (i32, i32) {
    %c0_i32 = arith.constant 0 : i32
    %c0_i32_0 = arith.constant 0 : i32
    %c0_i32_1 = arith.constant 0 : i32
    return %c0_i32, %c0_i32_0 : i32, i32
  }
  func.func @transform_2(%arg0: i32) -> (i32, i32) {
    %c0_i32 = arith.constant 0 : i32
    %c0_i32_0 = arith.constant 0 : i32
    %c0_i32_1 = arith.constant 0 : i32
    return %c0_i32, %c0_i32_0 : i32, i32
  }
  func.func @transform_3(%arg0: i32) -> (i32, i32) {
    %c0_i32 = arith.constant 0 : i32
    %c0_i32_0 = arith.constant 0 : i32
    %c0_i32_1 = arith.constant 0 : i32
    return %c0_i32, %c0_i32_0 : i32, i32
  }
  func.func @transform_4(%arg0: i32) -> (i32, i32) {
    %c0_i32 = arith.constant 0 : i32
    %c0_i32_0 = arith.constant 0 : i32
    %c0_i32_1 = arith.constant 0 : i32
    return %c0_i32, %c0_i32_0 : i32, i32
  }
  func.func @transform_5(%arg0: i32) -> (i32, i32) {
    %c0_i32 = arith.constant 0 : i32
    %c0_i32_0 = arith.constant 0 : i32
    %c0_i32_1 = arith.constant 0 : i32
    return %c0_i32, %c0_i32_0 : i32, i32
  }
  func.func @transform_6(%arg0: i32) -> (i32, i32) {
    %c0_i32 = arith.constant 0 : i32
    %c0_i32_0 = arith.constant 0 : i32
    %c0_i32_1 = arith.constant 0 : i32
    return %c0_i32, %c0_i32_0 : i32, i32
  }
}

</mosaic_0001>

<bundles_post_ra>
// kernel: basic_net_pallas.1
= control target key start
LH: loop header
LB: loop body
LE: loop exit
PB: predicated region body
PF: predicated region fallthrough
CT: control target
= control target key end

     0   :  { %v799_v2 = vmov 0   ;;  %vm104_vm0 = vcmask 392192   ;;  %s985_s0 = inlined_call_operand.vmem [shape: bf16[48,512], index: 0, kind: input, shape index: {}]   ;;  %s986_s1 = inlined_call_operand.vmem [shape: bf16[8,48], index: 1, kind: input, shape index: {}]   ;;  %s987_s2 = inlined_call_operand.vmem [shape: f32[8,1], index: 2, kind: input, shape index: {}]   ;;  %s988_s3 = inlined_call_operand.vmem [shape: bf16[512,2], index: 3, kind: input, shape index: {}]   ;;  %s989_s4 = inlined_call_operand.vmem [shape: bf16[8,128], index: 4, kind: input, shape index: {}]   ;;  %s990_s5 = inlined_call_operand.vmem [shape: f32[1,128], index: 5, kind: input, shape index: {}]   ;;  %s991_s6 = inlined_call_operand.hbm [shape: f32[2,128], index: 6, kind: output, shape index: {}]  }
   0x1   :  { %v727_v0 = vld [vmem:[%s985_s0 + $0x44] ss:$16 sps:$4 sm:$0xff]   ;;  %v729_v1 = vld [vmem:[%s985_s0 + $0x4c] ss:$16 sps:$4 sm:$0xff]   ;;  %140 = vmatprep.mubr.bf16.mxu0 %v799_v2  ;;  %181 = vmatprep.mubr.bf16.mxu1 %v799_v2  ;;  %v731_v3 = vld [vmem:[%s985_s0 + $0x40] ss:$16 sps:$4 sm:$0xff]  }
   0x2   :  { %118 = vmatprep.subr.bf16.mxu0 %v727_v0  ;;  %v732_v4 = vld [vmem:[%s985_s0 + $0x48] ss:$16 sps:$4 sm:$0xff]   ;;  %726 = vset.pattern.permute.xlu0 %v799_v2  ;;  %v733_v5 = vld [vmem:[%s985_s0 + $0x24] ss:$16 sps:$4 sm:$0xff]   ;;  %v735_v6 = vld [vmem:[%s985_s0 + $0x2c] ss:$16 sps:$4 sm:$0xff]  }
   0x3   :  { %159 = vmatprep.subr.bf16.mxu1 %v729_v1  ;;  %119 = vmatpush1.bf16.msra.mxu0 %v731_v3  ;;  %v737_v7 = vld [vmem:[%s985_s0 + $0x20] ss:$16 sps:$4 sm:$0xff]   ;;  %v738_v8 = vld [vmem:[%s985_s0 + $0x28] ss:$16 sps:$4 sm:$0xff]   ;;  %v739_v9 = vld [vmem:[%s985_s0 + $0x4] ss:$16 sps:$4 sm:$0xff]  }
   0x4   :  { %160 = vmatpush1.bf16.msra.mxu1 %v732_v4  ;;  %120 = vmatprep.subr.bf16.mxu0 %v733_v5  ;;  %v741_v10 = vld [vmem:[%s985_s0 + $0xc] ss:$16 sps:$4 sm:$0xff]   ;;  %v743_v11 = vld [vmem:[%s985_s0] ss:$16 sps:$4 sm:$0xff]   ;;  %v744_v12 = vld [vmem:[%s985_s0 + $0x8] ss:$16 sps:$4 sm:$0xff]  }
   0x5   :  { %161 = vmatprep.subr.bf16.mxu1 %v735_v6  ;;  %v38_v13 = vld [vmem:[%s987_s2] sm:$0xff]  ;;  %v745_v14 = vld [vmem:[%s988_s3 + $0x78] sm:$0xff]   ;;  %v749_v19 = vld [vmem:[%s988_s3 + $0x70] sm:$0xff]  }
   0x6   :  { %v25_v15 = vld [vmem:[%s986_s1] sm:$0xf]  ;;  %41 = vperm.xlu0 %726, %v38_v13   ;;  %v746_v16 = vld [vmem:[%s988_s3 + $0xf8] sm:$0xff]   ;;  %v750_v20 = vld [vmem:[%s988_s3 + $0xf0] sm:$0xff]  }
   0x7   :  { %121 = vmatpush1.bf16.msra.mxu0 %v737_v7  ;;  %v747_v17 = vld [vmem:[%s988_s3 + $0x38] sm:$0xff]   ;;  %v751_v21 = vld [vmem:[%s988_s3 + $0x30] sm:$0xff]   ;;  %v753_v23 = vld [vmem:[%s988_s3 + $0x68] sm:$0xff]  }
   0x8   :  { %162 = vmatpush1.bf16.msra.mxu1 %v738_v8  ;;  %122 = vmatprep.subr.bf16.mxu0 %v739_v9  ;;  %v748_v18 = vld [vmem:[%s988_s3 + $0xb8] sm:$0xff]   ;;  %v752_v22 = vld [vmem:[%s988_s3 + $0xb0] sm:$0xff]   ;;  %v754_v24 = vld [vmem:[%s988_s3 + $0xe8] sm:$0xff]  }
   0x9   :  { %163 = vmatprep.subr.bf16.mxu1 %v741_v10  ;;  %v755_v25 = vld [vmem:[%s988_s3 + $0x28] sm:$0xff]   ;;  %v757_v27 = vld [vmem:[%s988_s3 + $0x60] sm:$0xff]   ;;  %v761_v31 = vld [vmem:[%s988_s3 + $0x58] sm:$0xff]  }
   0xa   :  { %v756_v26 = vld [vmem:[%s988_s3 + $0xa8] sm:$0xff]   ;;  %v758_v28 = vld [vmem:[%s988_s3 + $0xe0] sm:$0xff]   ;;  %v762_v32 = vld [vmem:[%s988_s3 + $0xd8] sm:$0xff]  }
   0xb   :  { %123 = vmatpush1.bf16.msra.mxu0 %v743_v11  ;;  %v759_v29 = vld [vmem:[%s988_s3 + $0x20] sm:$0xff]   ;;  %v763_v33 = vld [vmem:[%s988_s3 + $0x18] sm:$0xff]   ;;  %v765_v35 = vld [vmem:[%s988_s3 + $0x50] sm:$0xff]  }
   0xc   :  { %164 = vmatpush1.bf16.msra.mxu1 %v744_v12  ;;  %670 = vmatprep.subr.bf16.mxu0 %v745_v14  ;;  %v760_v30 = vld [vmem:[%s988_s3 + $0xa0] sm:$0xff]   ;;  %v764_v34 = vld [vmem:[%s988_s3 + $0x98] sm:$0xff]   ;;  %v766_v36 = vld [vmem:[%s988_s3 + $0xd0] sm:$0xff]  }
   0xd   :  { %692 = vmatprep.subr.bf16.mxu1 %v746_v16  ;;  %v767_v37 = vld [vmem:[%s988_s3 + $0x10] sm:$0xff]  }
   0xe   :  { %634 = vmatmul.mubr.msk.bf16.vlgmr.msra.gmra.mxu0 %vm104_vm0, %v25_v15  ;;  %v768_v38 = vld [vmem:[%s988_s3 + $0x90] sm:$0xff]  }
   0xf   :  { %635 = vmatmul.mubr.msk.bf16.vlgmr.msra.gmra.mxu1 %vm104_vm0, %v25_v15  ;;  %671 = vmatpush3.bf16.msra.mxu0 %v747_v17 }
  0x10   :  { %693 = vmatpush3.bf16.msra.mxu1 %v748_v18  ;;  %672 = vmatprep.subr.bf16.mxu0 %v749_v19 }
  0x11   :  { %694 = vmatprep.subr.bf16.mxu1 %v750_v20 }
  0x13   :  { %673 = vmatpush3.bf16.msra.mxu0 %v751_v21 }
  0x14   :  { %695 = vmatpush3.bf16.msra.mxu1 %v752_v22  ;;  %674 = vmatprep.subr.bf16.mxu0 %v753_v23 }
  0x15   :  { %696 = vmatprep.subr.bf16.mxu1 %v754_v24 }
  0x17   :  { %675 = vmatpush3.bf16.msra.mxu0 %v755_v25 }
  0x18   :  { %697 = vmatpush3.bf16.msra.mxu1 %v756_v26  ;;  %676 = vmatprep.subr.bf16.mxu0 %v757_v27 }
  0x19   :  { %698 = vmatprep.subr.bf16.mxu1 %v758_v28 }
  0x1b   :  { %677 = vmatpush3.bf16.msra.mxu0 %v759_v29 }
  0x1c   :  { %699 = vmatpush3.bf16.msra.mxu1 %v760_v30  ;;  %678 = vmatprep.subr.bf16.mxu0 %v761_v31 }
  0x1d   :  { %700 = vmatprep.subr.bf16.mxu1 %v762_v32 }
  0x1f   :  { %679 = vmatpush3.bf16.msra.mxu0 %v763_v33 }
  0x20   :  { %701 = vmatpush3.bf16.msra.mxu1 %v764_v34  ;;  %680 = vmatprep.subr.bf16.mxu0 %v765_v35 }
  0x21   :  { %702 = vmatprep.subr.bf16.mxu1 %v766_v36 }
  0x23   :  { %681 = vmatpush3.bf16.msra.mxu0 %v767_v37 }
  0x24   :  { %703 = vmatpush3.bf16.msra.mxu1 %v768_v38 }
  0x25   :  { %11 = vsyncpa [#allocation3], 0  ;;  %v769_v39 = vld [vmem:[%s988_s3 + $0x48] sm:$0xff]   ;;  %v773_v43 = vld [vmem:[%s988_s3 + $0x40] sm:$0xff]   ;;  %vm563_vm1 = vcmask 1043456   ;;  %v800_v5 = vmov 0.0  }
  0x26   :  { %v770_v40 = vld [vmem:[%s988_s3 + $0xc8] sm:$0xff]   ;;  %682 = vmatprep.subr.bf16.mxu0 %v769_v39  ;;  %v774_v44 = vld [vmem:[%s988_s3 + $0xc0] sm:$0xff]   ;;  %vm801_vm2 = vmmov 0   ;;  %vm559_vm3 = vcmask 64512   ;;  %s802_s10 = smov [#allocation2]  }
  0x27   :  { %v771_v41 = vld [vmem:[%s988_s3 + $0x8] sm:$0xff]   ;;  %704 = vmatprep.subr.bf16.mxu1 %v770_v40  ;;  %v775_v45 = vld [vmem:[%s988_s3] sm:$0xff]   ;;  %s614_s11 = sshll.u32 %s802_s10, 4  ;;  %s615_s11 = int_to_ptr.vmem [resolvable:$true] %s614_s11 }
  0x28   :  { %v772_v42 = vld [vmem:[%s988_s3 + $0x88] sm:$0xff]   ;;  %683 = vmatpush3.bf16.msra.mxu0 %v771_v41  ;;  %v776_v46 = vld [vmem:[%s988_s3 + $0x80] sm:$0xff]   ;;  %s777_s12 = scalar_lea.vmem %s615_s11, 32  ;;  %p782_p1 = scmp.lt.s32.totalorder %s615_s11, %s615_s11 }
  0x29   :  { %705 = vmatpush3.bf16.msra.mxu1 %v772_v42  ;;  %684 = vmatprep.subr.bf16.mxu0 %v773_v43  ;;  %v535_v4 = vld [vmem:[%s989_s4] sm:$0xf]  ;;  %p778_p0 = scmp.ne.s32.totalorder %s615_s11, %s777_s12  ;;  %p783_p2 = scmp.lt.s32.totalorder %s777_s12, %s777_s12 }
  0x2a   :  { %706 = vmatprep.subr.bf16.mxu1 %v774_v44  ;;  %v565_v6 = vsel %vm563_vm1, %v535_v4, 0  ;;  %v668_v20 = vld [vmem:[%s990_s5] ss:$0 sm:$0xff] }
  0x2b   :  { %p784_p3 = por %p783_p2, %p782_p1 }
  0x2c   :  { %685 = vmatpush3.bf16.msra.mxu0 %v775_v45 }
  0x2d   :  { %707 = vmatpush3.bf16.msra.mxu1 %v776_v46  ;;  %716 = vmatprep.subr.bf16.mxu0 %v800_v5  ;;  %p785_p4 = pnand %p784_p3, %p778_p0 }
  0x81   :  { %v42_v47 = vpop.permute.xlu0 %41 }
  0xce   :  { %v142_v48 = vpop.f32.mrf.mxu0 }
  0xcf   :  { %v183_v49 = vpop.f32.mrf.mxu1  ;;  %v143_v50 = vadd.f32 %v142_v48, %v42_v47 }
  0xd0   :  { %v184_v51 = vadd.f32 %v183_v49, %v42_v47  ;;  %v144_v52 = vpop.f32.mrf.mxu0 }
  0xd1   :  { %v185_v53 = vpop.f32.mrf.mxu1  ;;  %v145_v54 = vadd.f32 %v144_v52, %v42_v47  ;;  %v190_v56 = vmax.f32 %v143_v50, 0.0 }
  0xd2   :  { %v186_v55 = vadd.f32 %v185_v53, %v42_v47  ;;  %v192_v57 = vmax.f32 %v184_v51, 0.0  ;;  %v146_v58 = vpop.f32.mrf.mxu0 }
  0xd3   :  { %v187_v59 = vpop.f32.mrf.mxu1  ;;  %v191_v60 = vmax.f32 %v145_v54, 0.0  ;;  %v194_v2 = vpack.c.bf16 %v190_v56, %v190_v56 }
  0xd4   :  { %v193_v61 = vmax.f32 %v186_v55, 0.0  ;;  %v147_v62 = vpop.f32.mrf.mxu0  ;;  %v196_v3 = vpack.c.bf16 %v192_v57, %v192_v57 }
  0xd5   :  { %v188_v63 = vpop.f32.mrf.mxu1  ;;  %v195_v0 = vpack.c.bf16 %v191_v60, %v191_v60 }
  0xd6   :  { %v197_v1 = vpack.c.bf16 %v193_v61, %v193_v61 }
  0xd7   :  { %486 = vmatprep.mubr.bf16.mxu0 %v195_v0 }
  0xd8   :  { %526 = vmatprep.mubr.bf16.mxu1 %v197_v1  ;;  %487 = vmatmul.mubr.bf16.vlgmr.msra.gmra.mxu0 %v194_v2 }
  0xd9   :  { %527 = vmatmul.mubr.bf16.vlgmr.msra.gmra.mxu1 %v196_v3  ;;  %718 = vmatprep.mubr.msk.bf16.mxu0 %vm801_vm2, %v800_v5 }
  0xda   :  { %717 = vmatpush3.bf16.msra.mxu0 %v565_v6 }
 0x198   :  { %v686_v7 = vpop.f32.mrf.mxu0 }
 0x199   :  { %v708_v8 = vpop.f32.mrf.mxu1 }
 0x19a   :  { %v687_v9 = vpop.f32.mrf.mxu0 }
 0x19b   :  { %v709_v10 = vpop.f32.mrf.mxu1  ;;  %v688_v11 = vadd.f32 %v687_v9, %v686_v7 }
 0x19c   :  { %v710_v12 = vadd.f32 %v709_v10, %v708_v8  ;;  %v689_v13 = vpop.f32.mrf.mxu0 }
 0x19d   :  { %v711_v14 = vpop.f32.mrf.mxu1 }
 0x19e   :  { %v529_v15 = vadd.f32 %v710_v12, %v688_v11  ;;  %v690_v16 = vpop.f32.mrf.mxu0 }
 0x19f   :  { %v712_v17 = vpop.f32.mrf.mxu1 }
 0x1a0   :  { %v534_v18 = vpack.c.bf16 %v529_v15, %v529_v15 }
 0x1a2   :  { %543 = vxpose.xlu0.c.b16.start.end [1/1] (short) (narrow) %v534_v18, 16 }
 0x204   :  { %v551_v19 = vpop.trf.xlu0 }
 0x205   :  { %719 = vmatmul.mubr.msk.bf16.vlgmr.msra.gmra.mxu0 %vm559_vm3, %v551_v19 }
 0x2c5   :  { %v601_v21 = vpop.f32.mrf.mxu0 }
 0x2c6   :  { %v602_v22 = vadd.f32 %v668_v20, %v601_v21 }
 0x2c7   :  { %v720_v23 = vpop.f32.mrf.mxu0 }
 0x2c8   :  { %607 = vst [vmem:[#allocation2] sm:$0x3] %v602_v22 }
 0x2c9   :  { %v604_v24 = vpop.f32.mrf.mxu0 }
 0x2ca   :  { %788 = shalt.err (!%p785_p4)
}
 0x2cb   :  { %617 = dma.vmem_to_hbm [thread:$0]  %s615_s11, 32, %s991_s6, [#allocation3]   ;;  %v721_v25 = vpop.f32.mrf.mxu0 }
 0x2cc   :  { %797 = dma.done.wait [#allocation3], 32  }
 0x2cd   :  { %798 = vsyncadd [#allocation3], 4294967264 }
 0x2ce   :  { %621 = vsyncpa [#allocation3], 1 }

</bundles_post_ra>
